<compile_context>
chip_gen: v5e
topology: v5e:2x2
jax: 0.10.0
libtpu: 0.0.40
codegen_flags: <defaults>
</compile_context>

<pallas_src>
import math

import jax
import jax.numpy as jnp
from jax.experimental import pallas as pl
from jax.experimental.pallas import tpu as pltpu


def _round_up(x, m):
    return -(-x // m) * m


def _vmem_limit_bytes():
    """~3/4 of physical VMEM, capped at 100 MiB (v5e/v6e ~96 MiB, v7x 48 MiB)."""
    cap = 64 * 1024 * 1024                      # safe fallback on every chip
    try:
        info = pltpu.get_tpu_info()
        cap = int(getattr(info, "vmem_capacity_bytes", cap) or cap)
    except Exception:
        pass
    return int(min(cap * 3 // 4, 100 * 1024 * 1024))


def _pick_tile_freqs(num_freqs, batch_tile, cin, cout, vmem_limit_bytes,
                     max_unroll=128):
    """Frequencies per grid step, sized against the VMEM limit.

    Footprint is (8,128)-tile-padding aware so lane-sparse channel counts do
    not silently overshoot the declared limit.
    """
    r8 = lambda v: _round_up(max(int(v), 1), 8)
    r128 = lambda v: _round_up(max(int(v), 1), 128)
    per_freq = 4 * (2 * batch_tile * r128(cin)        # xr + xi blocks
                    + 2 * r8(cin) * r128(cout)        # wr + wi blocks
                    + 8 * r128(2 * cout)              # bias block (sublane pad)
                    + batch_tile * r128(2 * cout))    # output block
    budget = int(vmem_limit_bytes) * 3 // 4           # ~25% headroom
    tf = budget // (2 * per_freq)                     # double-buffered pipeline
    tf = max(8, (tf // 8) * 8)                        # block-shape rule (x8)
    tf = min(tf, max_unroll)
    # Keep >= 2 grid steps along the frequency axis when possible so both
    # TensorCores get work on v7x (dimension_semantics "parallel").
    half = _round_up(max(1, -(-num_freqs // 2)), 8)
    return max(8, min(tf, half))


def _banded_fourier_kernel(xr_ref, xi_ref, wr_ref, wi_ref, b_ref, o_ref):
    """Per-frequency complex matmul + bias, [real | imag]-stacked store.

    Block shapes:
      xr/xi: (tb, tf, Cin)   wr/wi: (tf, Cin, Cout)
      b:     (tf, 1, 2*Cout) o:     (tb, tf, 2*Cout)
    tf is a trace-time constant -> static unroll; everything uses static
    slicing and plain 2-D MXU dots (no in-kernel transposes / batched dots).
    """
    tf = wr_ref.shape[0]
    for f in range(tf):
        xr = xr_ref[:, f, :]                     # (tb, Cin)
        xi = xi_ref[:, f, :]
        wr = wr_ref[f]                           # (Cin, Cout)
        wi = wi_ref[f]
        rr = jnp.dot(xr, wr, preferred_element_type=jnp.float32)
        ii = jnp.dot(xi, wi, preferred_element_type=jnp.float32)
        ri = jnp.dot(xr, wi, preferred_element_type=jnp.float32)
        ir = jnp.dot(xi, wr, preferred_element_type=jnp.float32)
        out = jnp.concatenate([rr - ii, ri + ir], axis=-1)   # (tb, 2*Cout) f32
        o_ref[:, f, :] = out + b_ref[f]                       # bias (1, 2*Cout)


def banded_complex_matmul(xr, xi, wr, wi, b2, *, tf, tb, vmem_limit):
    """xr/xi: (B, F_pad, Cin) f32/bf16, wr/wi: (F_pad, Cin, Cout),
    b2: (F_pad, 1, 2*Cout) f32  ->  (B, F_pad, 2*Cout) f32 = [out_r | out_i]."""
    B, F_pad, Cin = xr.shape
    Cout = wr.shape[-1]

    B_pad = _round_up(B, tb)
    if B_pad != B:
        xr = jnp.pad(xr, ((0, B_pad - B), (0, 0), (0, 0)))
        xi = jnp.pad(xi, ((0, B_pad - B), (0, 0), (0, 0)))

    # Frequency outer, batch inner: the weight block index is constant over the
    # inner batch sweep, so the weight tile is not re-fetched per batch tile.
    grid = (F_pad // tf, B_pad // tb)
    x_spec = pl.BlockSpec((tb, tf, Cin), lambda f, b: (b, f, 0))
    w_spec = pl.BlockSpec((tf, Cin, Cout), lambda f, b: (f, 0, 0))
    b_spec = pl.BlockSpec((tf, 1, 2 * Cout), lambda f, b: (f, 0, 0))
    o_spec = pl.BlockSpec((tb, tf, 2 * Cout), lambda f, b: (b, f, 0))

    out = pl.pallas_call(
        _banded_fourier_kernel,
        grid=grid,
        in_specs=[x_spec, x_spec, w_spec, w_spec, b_spec],
        out_specs=o_spec,
        out_shape=jax.ShapeDtypeStruct((B_pad, F_pad, 2 * Cout), jnp.float32),
        compiler_params=pltpu.CompilerParams(
            dimension_semantics=("parallel", "parallel"),
            vmem_limit_bytes=int(vmem_limit)),
    )(xr, xi, wr, wi, b2)
    return out[:B] if B_pad != B else out


class BandedFourierLayerPallas:
    """JAX / Pallas re-implementation of BandedFourierLayer."""

    def __init__(self, in_channels, out_channels, band, num_bands, length=201,
                 key=None, batch_hint=64, max_batch_tile=256, max_unroll=128,
                 compute_dtype=jnp.float32):
        if key is None:
            key = jax.random.PRNGKey(0)
        self.length = length
        self.total_freqs = length // 2 + 1
        self.in_channels = in_channels
        self.out_channels = out_channels
        self.band = band
        self.num_bands = num_bands
        self.compute_dtype = compute_dtype
        self.max_batch_tile = max_batch_tile
        self.max_unroll = max_unroll
        self.num_freqs = self.total_freqs // num_bands + (
            self.total_freqs % num_bands if band == num_bands - 1 else 0)
        self.start = band * (self.total_freqs // num_bands)
        self.end = self.start + self.num_freqs

        # Deterministic init mimicking kaiming_uniform_(a=sqrt(5)) / uniform bias.
        # For a (F, Cin, Cout) tensor PyTorch computes fan_in = Cin * Cout.
        k_wr, k_wi, k_br, k_bi = jax.random.split(key, 4)
        fan_in = in_channels * out_channels
        gain = math.sqrt(2.0 / (1.0 + 5.0))            # a = sqrt(5)
        w_bound = gain * math.sqrt(3.0 / fan_in)
        b_bound = 1.0 / math.sqrt(fan_in)
        wshape = (self.num_freqs, in_channels, out_channels)
        bshape = (self.num_freqs, out_channels)
        self.weight_r = jax.random.uniform(k_wr, wshape, jnp.float32, -w_bound, w_bound)
        self.weight_i = jax.random.uniform(k_wi, wshape, jnp.float32, -w_bound, w_bound)
        self.bias_r = jax.random.uniform(k_br, bshape, jnp.float32, -b_bound, b_bound)
        self.bias_i = jax.random.uniform(k_bi, bshape, jnp.float32, -b_bound, b_bound)

        # --- static kernel-side operands: tiled / padded ONCE here -----------
        self.vmem_limit = _vmem_limit_bytes()
        tb_hint = min(batch_hint, max_batch_tile)
        self.tf = _pick_tile_freqs(self.num_freqs, tb_hint, in_channels,
                                   out_channels, self.vmem_limit, max_unroll)
        self.f_pad = _round_up(self.num_freqs, self.tf)
        pad = self.f_pad - self.num_freqs

        def fpad(a):  # zero-pad the frequency (leading) axis only
            if pad == 0:
                return a
            return jnp.pad(a, ((0, pad),) + ((0, 0),) * (a.ndim - 1))

        # Un-duplicated weight streams (halves weight HBM traffic vs real-block W2).
        self.w_r = fpad(self.weight_r).astype(compute_dtype)
        self.w_i = fpad(self.weight_i).astype(compute_dtype)
        # Stacked bias [br | bi]: (F_pad, 1, 2*Cout) f32 (padded rows are zero,
        # so padded frequencies compute exactly zero).
        b2 = jnp.concatenate([self.bias_r, self.bias_i], axis=-1)[:, None, :]
        self.b2 = fpad(b2).astype(jnp.float32)

    def _call_tiles(self, batch):
        tb = min(batch, self.max_batch_tile)
        desired = _pick_tile_freqs(self.num_freqs, tb, self.in_channels,
                                   self.out_channels, self.vmem_limit,
                                   self.max_unroll)
        tf = min(self.tf, desired)
        while self.f_pad % tf:      # must divide the statically padded extent
            tf -= 8
        return max(8, tf), tb

    def __call__(self, x):
        # x: (B, T, Cin) float32
        b, t, _ = x.shape
        total = t // 2 + 1
        # TODO(synk): rfft/irfft have no Pallas TPU equivalent; done in plain JAX.
        x_fft = jnp.fft.rfft(x, axis=1)                  # (B, total, Cin) c64
        band = x_fft[:, self.start:self.end]             # (B, F, Cin) c64

        # Batch-major activations (no wrapper transposes); pad F only.
        xr = jnp.real(band).astype(self.compute_dtype)
        xi = jnp.imag(band).astype(self.compute_dtype)
        fpad = self.f_pad - self.num_freqs
        if fpad:
            xr = jnp.pad(xr, ((0, 0), (0, fpad), (0, 0)))
            xi = jnp.pad(xi, ((0, 0), (0, fpad), (0, 0)))

        tf, tb = self._call_tiles(b)
        out2 = banded_complex_matmul(xr, xi, self.w_r, self.w_i, self.b2,
                                     tf=tf, tb=tb, vmem_limit=self.vmem_limit)
        out2 = out2[:, :self.num_freqs]                  # (B, F, 2*Cout) f32
        out_band = jax.lax.complex(out2[..., :self.out_channels],
                                   out2[..., self.out_channels:])  # (B,F,Cout) c64

        # Place the band at [start:end] of the frequency axis via padding.
        output_fft = jnp.pad(
            out_band, ((0, 0), (self.start, total - self.end), (0, 0)))
        return jnp.fft.irfft(output_fft, n=t, axis=1)    # (B, T, Cout) f32


def _reference_forward(layer, x):
    """Pure-JAX reference mirroring the PyTorch forward (for validation)."""
    b, t, _ = x.shape
    x_fft = jnp.fft.rfft(x, axis=1)
    w = (layer.weight_r + 1j * layer.weight_i).astype(jnp.complex64)
    bias = (layer.bias_r + 1j * layer.bias_i).astype(jnp.complex64)
    out = jnp.einsum('bti,tio->bto', x_fft[:, layer.start:layer.end], w,
                     precision=jax.lax.Precision.HIGHEST) + bias
    output_fft = jnp.zeros((b, t // 2 + 1, layer.out_channels),
                           dtype=jnp.complex64)
    output_fft = output_fft.at[:, layer.start:layer.end].set(
        out.astype(jnp.complex64))
    return jnp.fft.irfft(output_fft, n=t, axis=1)


if __name__ == "__main__":
    key = jax.random.PRNGKey(0)

    # --- Config A: small shapes, single frequency tile -----------------------
    k_in, k_param, key = jax.random.split(key, 3)
    batch, seq_len, in_ch, out_ch = 2, 16, 8, 8
    layer_a = BandedFourierLayerPallas(in_ch, out_ch, band=0, num_bands=2,
                                       length=seq_len, key=k_param)
    x_a = jax.random.normal(k_in, (batch, seq_len, in_ch), dtype=jnp.float32)
    out_a = jax.block_until_ready(layer_a(x_a))
    ref_a = jax.block_until_ready(_reference_forward(layer_a, x_a))
    assert out_a.shape == (batch, seq_len, out_ch)
    assert jnp.allclose(out_a, ref_a, rtol=1e-3, atol=1e-4), (
        "config A mismatch: max abs err = %e"
        % float(jnp.max(jnp.abs(out_a - ref_a))))

    # --- Config B: last band (remainder freqs), 2-step frequency grid --------
    k_in2, k_param2, key = jax.random.split(key, 3)
    batch_b, seq_b, in_b, out_b_ch = 3, 32, 8, 4
    layer_b = BandedFourierLayerPallas(in_b, out_b_ch, band=1, num_bands=2,
                                       length=seq_b, key=k_param2)
    x_b = jax.random.normal(k_in2, (batch_b, seq_b, in_b), dtype=jnp.float32)
    out_b = jax.block_until_ready(layer_b(x_b))
    ref_b = jax.block_until_ready(_reference_forward(layer_b, x_b))
    assert out_b.shape == (batch_b, seq_b, out_b_ch)
    assert jnp.allclose(out_b, ref_b, rtol=1e-3, atol=1e-4), (
        "config B mismatch: max abs err = %e"
        % float(jnp.max(jnp.abs(out_b - ref_b))))

    print("KERNEL_OK")
</pallas_src>

<mosaic_0001>
module attributes {stable_mosaic.version = 11 : i64} {
  func.func @_banded_fourier_kernel(%arg0: i32, %arg1: i32, %arg2: memref<2x8x8xf32, #tpu.memory_space<vmem>>, %arg3: memref<2x8x8xf32, #tpu.memory_space<vmem>>, %arg4: memref<8x8x8xf32, #tpu.memory_space<vmem>>, %arg5: memref<8x8x8xf32, #tpu.memory_space<vmem>>, %arg6: memref<8x1x16xf32, #tpu.memory_space<vmem>>, %arg7: memref<2x8x16xf32, #tpu.memory_space<vmem>>) attributes {dimension_semantics = [#tpu.dimension_semantics<parallel>, #tpu.dimension_semantics<parallel>], iteration_bounds = array<i64: 1, 1>, scalar_prefetch = 0 : i64, scratch_operands = 0 : i64, tpu.core_type = #tpu.core_type<tc>, window_params = [{transform_indices = @transform_0, window_bounds = array<i64: 2, 8, 8>}, {transform_indices = @transform_1, window_bounds = array<i64: 2, 8, 8>}, {transform_indices = @transform_2, window_bounds = array<i64: 8, 8, 8>}, {transform_indices = @transform_3, window_bounds = array<i64: 8, 8, 8>}, {transform_indices = @transform_4, window_bounds = array<i64: 8, 1, 16>}, {transform_indices = @transform_5, window_bounds = array<i64: 2, 8, 16>}]} {
    %c0 = arith.constant 0 : index
    %c0_0 = arith.constant 0 : index
    %c0_1 = arith.constant 0 : index
    %0 = vector.load %arg2[%c0, %c0_0, %c0_1] : memref<2x8x8xf32, #tpu.memory_space<vmem>>, vector<2x1x8xf32>
    %1 = vector.shape_cast %0 : vector<2x1x8xf32> to vector<2x8xf32>
    %c0_2 = arith.constant 0 : index
    %c0_3 = arith.constant 0 : index
    %c0_4 = arith.constant 0 : index
    %2 = vector.load %arg3[%c0_2, %c0_3, %c0_4] : memref<2x8x8xf32, #tpu.memory_space<vmem>>, vector<2x1x8xf32>
    %3 = vector.shape_cast %2 : vector<2x1x8xf32> to vector<2x8xf32>
    %c0_5 = arith.constant 0 : index
    %c0_6 = arith.constant 0 : index
    %c0_7 = arith.constant 0 : index
    %4 = vector.load %arg4[%c0_5, %c0_6, %c0_7] : memref<8x8x8xf32, #tpu.memory_space<vmem>>, vector<1x8x8xf32>
    %5 = vector.shape_cast %4 : vector<1x8x8xf32> to vector<8x8xf32>
    %c0_8 = arith.constant 0 : index
    %c0_9 = arith.constant 0 : index
    %c0_10 = arith.constant 0 : index
    %6 = vector.load %arg5[%c0_8, %c0_9, %c0_10] : memref<8x8x8xf32, #tpu.memory_space<vmem>>, vector<1x8x8xf32>
    %7 = vector.shape_cast %6 : vector<1x8x8xf32> to vector<8x8xf32>
    %cst = arith.constant dense<0.000000e+00> : vector<2x8xf32>
    %8 = tpu.matmul %1, %5, %cst {dimension_numbers = #tpu.dot_dimension_numbers<[1], [0], [0], [1], [0, 0, 1, 1], [], []>} : vector<2x8xf32>, vector<8x8xf32>, vector<2x8xf32> -> vector<2x8xf32>
    %cst_11 = arith.constant dense<0.000000e+00> : vector<2x8xf32>
    %9 = tpu.matmul %3, %7, %cst_11 {dimension_numbers = #tpu.dot_dimension_numbers<[1], [0], [0], [1], [0, 0, 1, 1], [], []>} : vector<2x8xf32>, vector<8x8xf32>, vector<2x8xf32> -> vector<2x8xf32>
    %cst_12 = arith.constant dense<0.000000e+00> : vector<2x8xf32>
    %10 = tpu.matmul %1, %7, %cst_12 {dimension_numbers = #tpu.dot_dimension_numbers<[1], [0], [0], [1], [0, 0, 1, 1], [], []>} : vector<2x8xf32>, vector<8x8xf32>, vector<2x8xf32> -> vector<2x8xf32>
    %cst_13 = arith.constant dense<0.000000e+00> : vector<2x8xf32>
    %11 = tpu.matmul %3, %5, %cst_13 {dimension_numbers = #tpu.dot_dimension_numbers<[1], [0], [0], [1], [0, 0, 1, 1], [], []>} : vector<2x8xf32>, vector<8x8xf32>, vector<2x8xf32> -> vector<2x8xf32>
    %12 = arith.subf %8, %9 : vector<2x8xf32>
    %13 = arith.addf %10, %11 : vector<2x8xf32>
    %14 = tpu.concatenate %12, %13 in 1 : vector<2x8xf32>, vector<2x8xf32> -> vector<2x16xf32>
    %c0_14 = arith.constant 0 : index
    %c0_15 = arith.constant 0 : index
    %c0_16 = arith.constant 0 : index
    %15 = vector.load %arg6[%c0_14, %c0_15, %c0_16] : memref<8x1x16xf32, #tpu.memory_space<vmem>>, vector<1x1x16xf32>
    %16 = vector.shape_cast %15 : vector<1x1x16xf32> to vector<1x16xf32>
    %17 = vector.broadcast %16 : vector<1x16xf32> to vector<2x16xf32>
    %18 = arith.addf %14, %17 : vector<2x16xf32>
    %c0_17 = arith.constant 0 : index
    %c0_18 = arith.constant 0 : index
    %c0_19 = arith.constant 0 : index
    %19 = vector.load %arg7[%c0_17, %c0_18, %c0_19] : memref<2x8x16xf32, #tpu.memory_space<vmem>>, vector<2x1x16xf32>
    %20 = vector.shape_cast %19 : vector<2x1x16xf32> to vector<2x16xf32>
    %21 = vector.shape_cast %18 : vector<2x16xf32> to vector<2x1x16xf32>
    tpu.vector_store %arg7[%c0_17, %c0_18, %c0_19], %21 {strides = array<i32>} : memref<2x8x16xf32, #tpu.memory_space<vmem>>, vector<2x1x16xf32>,
    %c0_20 = arith.constant 0 : index
    %c1 = arith.constant 1 : index
    %c0_21 = arith.constant 0 : index
    %22 = vector.load %arg2[%c0_20, %c1, %c0_21] : memref<2x8x8xf32, #tpu.memory_space<vmem>>, vector<2x1x8xf32>
    %23 = vector.shape_cast %22 : vector<2x1x8xf32> to vector<2x8xf32>
    %c0_22 = arith.constant 0 : index
    %c1_23 = arith.constant 1 : index
    %c0_24 = arith.constant 0 : index
    %24 = vector.load %arg3[%c0_22, %c1_23, %c0_24] : memref<2x8x8xf32, #tpu.memory_space<vmem>>, vector<2x1x8xf32>
    %25 = vector.shape_cast %24 : vector<2x1x8xf32> to vector<2x8xf32>
    %c1_25 = arith.constant 1 : index
    %c0_26 = arith.constant 0 : index
    %c0_27 = arith.constant 0 : index
    %26 = vector.load %arg4[%c1_25, %c0_26, %c0_27] : memref<8x8x8xf32, #tpu.memory_space<vmem>>, vector<1x8x8xf32>
    %27 = vector.shape_cast %26 : vector<1x8x8xf32> to vector<8x8xf32>
    %c1_28 = arith.constant 1 : index
    %c0_29 = arith.constant 0 : index
    %c0_30 = arith.constant 0 : index
    %28 = vector.load %arg5[%c1_28, %c0_29, %c0_30] : memref<8x8x8xf32, #tpu.memory_space<vmem>>, vector<1x8x8xf32>
    %29 = vector.shape_cast %28 : vector<1x8x8xf32> to vector<8x8xf32>
    %cst_31 = arith.constant dense<0.000000e+00> : vector<2x8xf32>
    %30 = tpu.matmul %23, %27, %cst_31 {dimension_numbers = #tpu.dot_dimension_numbers<[1], [0], [0], [1], [0, 0, 1, 1], [], []>} : vector<2x8xf32>, vector<8x8xf32>, vector<2x8xf32> -> vector<2x8xf32>
    %cst_32 = arith.constant dense<0.000000e+00> : vector<2x8xf32>
    %31 = tpu.matmul %25, %29, %cst_32 {dimension_numbers = #tpu.dot_dimension_numbers<[1], [0], [0], [1], [0, 0, 1, 1], [], []>} : vector<2x8xf32>, vector<8x8xf32>, vector<2x8xf32> -> vector<2x8xf32>
    %cst_33 = arith.constant dense<0.000000e+00> : vector<2x8xf32>
    %32 = tpu.matmul %23, %29, %cst_33 {dimension_numbers = #tpu.dot_dimension_numbers<[1], [0], [0], [1], [0, 0, 1, 1], [], []>} : vector<2x8xf32>, vector<8x8xf32>, vector<2x8xf32> -> vector<2x8xf32>
    %cst_34 = arith.constant dense<0.000000e+00> : vector<2x8xf32>
    %33 = tpu.matmul %25, %27, %cst_34 {dimension_numbers = #tpu.dot_dimension_numbers<[1], [0], [0], [1], [0, 0, 1, 1], [], []>} : vector<2x8xf32>, vector<8x8xf32>, vector<2x8xf32> -> vector<2x8xf32>
    %34 = arith.subf %30, %31 : vector<2x8xf32>
    %35 = arith.addf %32, %33 : vector<2x8xf32>
    %36 = tpu.concatenate %34, %35 in 1 : vector<2x8xf32>, vector<2x8xf32> -> vector<2x16xf32>
    %c1_35 = arith.constant 1 : index
    %c0_36 = arith.constant 0 : index
    %c0_37 = arith.constant 0 : index
    %37 = vector.load %arg6[%c1_35, %c0_36, %c0_37] : memref<8x1x16xf32, #tpu.memory_space<vmem>>, vector<1x1x16xf32>
    %38 = vector.shape_cast %37 : vector<1x1x16xf32> to vector<1x16xf32>
    %39 = vector.broadcast %38 : vector<1x16xf32> to vector<2x16xf32>
    %40 = arith.addf %36, %39 : vector<2x16xf32>
    %c0_38 = arith.constant 0 : index
    %c1_39 = arith.constant 1 : index
    %c0_40 = arith.constant 0 : index
    %41 = vector.load %arg7[%c0_38, %c1_39, %c0_40] : memref<2x8x16xf32, #tpu.memory_space<vmem>>, vector<2x1x16xf32>
    %42 = vector.shape_cast %41 : vector<2x1x16xf32> to vector<2x16xf32>
    %43 = vector.shape_cast %40 : vector<2x16xf32> to vector<2x1x16xf32>
    tpu.vector_store %arg7[%c0_38, %c1_39, %c0_40], %43 {strides = array<i32>} : memref<2x8x16xf32, #tpu.memory_space<vmem>>, vector<2x1x16xf32>,
    %c0_41 = arith.constant 0 : index
    %c2 = arith.constant 2 : index
    %c0_42 = arith.constant 0 : index
    %44 = vector.load %arg2[%c0_41, %c2, %c0_42] : memref<2x8x8xf32, #tpu.memory_space<vmem>>, vector<2x1x8xf32>
    %45 = vector.shape_cast %44 : vector<2x1x8xf32> to vector<2x8xf32>
    %c0_43 = arith.constant 0 : index
    %c2_44 = arith.constant 2 : index
    %c0_45 = arith.constant 0 : index
    %46 = vector.load %arg3[%c0_43, %c2_44, %c0_45] : memref<2x8x8xf32, #tpu.memory_space<vmem>>, vector<2x1x8xf32>
    %47 = vector.shape_cast %46 : vector<2x1x8xf32> to vector<2x8xf32>
    %c2_46 = arith.constant 2 : index
    %c0_47 = arith.constant 0 : index
    %c0_48 = arith.constant 0 : index
    %48 = vector.load %arg4[%c2_46, %c0_47, %c0_48] : memref<8x8x8xf32, #tpu.memory_space<vmem>>, vector<1x8x8xf32>
    %49 = vector.shape_cast %48 : vector<1x8x8xf32> to vector<8x8xf32>
    %c2_49 = arith.constant 2 : index
    %c0_50 = arith.constant 0 : index
    %c0_51 = arith.constant 0 : index
    %50 = vector.load %arg5[%c2_49, %c0_50, %c0_51] : memref<8x8x8xf32, #tpu.memory_space<vmem>>, vector<1x8x8xf32>
    %51 = vector.shape_cast %50 : vector<1x8x8xf32> to vector<8x8xf32>
    %cst_52 = arith.constant dense<0.000000e+00> : vector<2x8xf32>
    %52 = tpu.matmul %45, %49, %cst_52 {dimension_numbers = #tpu.dot_dimension_numbers<[1], [0], [0], [1], [0, 0, 1, 1], [], []>} : vector<2x8xf32>, vector<8x8xf32>, vector<2x8xf32> -> vector<2x8xf32>
    %cst_53 = arith.constant dense<0.000000e+00> : vector<2x8xf32>
    %53 = tpu.matmul %47, %51, %cst_53 {dimension_numbers = #tpu.dot_dimension_numbers<[1], [0], [0], [1], [0, 0, 1, 1], [], []>} : vector<2x8xf32>, vector<8x8xf32>, vector<2x8xf32> -> vector<2x8xf32>
    %cst_54 = arith.constant dense<0.000000e+00> : vector<2x8xf32>
    %54 = tpu.matmul %45, %51, %cst_54 {dimension_numbers = #tpu.dot_dimension_numbers<[1], [0], [0], [1], [0, 0, 1, 1], [], []>} : vector<2x8xf32>, vector<8x8xf32>, vector<2x8xf32> -> vector<2x8xf32>
    %cst_55 = arith.constant dense<0.000000e+00> : vector<2x8xf32>
    %55 = tpu.matmul %47, %49, %cst_55 {dimension_numbers = #tpu.dot_dimension_numbers<[1], [0], [0], [1], [0, 0, 1, 1], [], []>} : vector<2x8xf32>, vector<8x8xf32>, vector<2x8xf32> -> vector<2x8xf32>
    %56 = arith.subf %52, %53 : vector<2x8xf32>
    %57 = arith.addf %54, %55 : vector<2x8xf32>
    %58 = tpu.concatenate %56, %57 in 1 : vector<2x8xf32>, vector<2x8xf32> -> vector<2x16xf32>
    %c2_56 = arith.constant 2 : index
    %c0_57 = arith.constant 0 : index
    %c0_58 = arith.constant 0 : index
    %59 = vector.load %arg6[%c2_56, %c0_57, %c0_58] : memref<8x1x16xf32, #tpu.memory_space<vmem>>, vector<1x1x16xf32>
    %60 = vector.shape_cast %59 : vector<1x1x16xf32> to vector<1x16xf32>
    %61 = vector.broadcast %60 : vector<1x16xf32> to vector<2x16xf32>
    %62 = arith.addf %58, %61 : vector<2x16xf32>
    %c0_59 = arith.constant 0 : index
    %c2_60 = arith.constant 2 : index
    %c0_61 = arith.constant 0 : index
    %63 = vector.load %arg7[%c0_59, %c2_60, %c0_61] : memref<2x8x16xf32, #tpu.memory_space<vmem>>, vector<2x1x16xf32>
    %64 = vector.shape_cast %63 : vector<2x1x16xf32> to vector<2x16xf32>
    %65 = vector.shape_cast %62 : vector<2x16xf32> to vector<2x1x16xf32>
    tpu.vector_store %arg7[%c0_59, %c2_60, %c0_61], %65 {strides = array<i32>} : memref<2x8x16xf32, #tpu.memory_space<vmem>>, vector<2x1x16xf32>,
    %c0_62 = arith.constant 0 : index
    %c3 = arith.constant 3 : index
    %c0_63 = arith.constant 0 : index
    %66 = vector.load %arg2[%c0_62, %c3, %c0_63] : memref<2x8x8xf32, #tpu.memory_space<vmem>>, vector<2x1x8xf32>
    %67 = vector.shape_cast %66 : vector<2x1x8xf32> to vector<2x8xf32>
    %c0_64 = arith.constant 0 : index
    %c3_65 = arith.constant 3 : index
    %c0_66 = arith.constant 0 : index
    %68 = vector.load %arg3[%c0_64, %c3_65, %c0_66] : memref<2x8x8xf32, #tpu.memory_space<vmem>>, vector<2x1x8xf32>
    %69 = vector.shape_cast %68 : vector<2x1x8xf32> to vector<2x8xf32>
    %c3_67 = arith.constant 3 : index
    %c0_68 = arith.constant 0 : index
    %c0_69 = arith.constant 0 : index
    %70 = vector.load %arg4[%c3_67, %c0_68, %c0_69] : memref<8x8x8xf32, #tpu.memory_space<vmem>>, vector<1x8x8xf32>
    %71 = vector.shape_cast %70 : vector<1x8x8xf32> to vector<8x8xf32>
    %c3_70 = arith.constant 3 : index
    %c0_71 = arith.constant 0 : index
    %c0_72 = arith.constant 0 : index
    %72 = vector.load %arg5[%c3_70, %c0_71, %c0_72] : memref<8x8x8xf32, #tpu.memory_space<vmem>>, vector<1x8x8xf32>
    %73 = vector.shape_cast %72 : vector<1x8x8xf32> to vector<8x8xf32>
    %cst_73 = arith.constant dense<0.000000e+00> : vector<2x8xf32>
    %74 = tpu.matmul %67, %71, %cst_73 {dimension_numbers = #tpu.dot_dimension_numbers<[1], [0], [0], [1], [0, 0, 1, 1], [], []>} : vector<2x8xf32>, vector<8x8xf32>, vector<2x8xf32> -> vector<2x8xf32>
    %cst_74 = arith.constant dense<0.000000e+00> : vector<2x8xf32>
    %75 = tpu.matmul %69, %73, %cst_74 {dimension_numbers = #tpu.dot_dimension_numbers<[1], [0], [0], [1], [0, 0, 1, 1], [], []>} : vector<2x8xf32>, vector<8x8xf32>, vector<2x8xf32> -> vector<2x8xf32>
    %cst_75 = arith.constant dense<0.000000e+00> : vector<2x8xf32>
    %76 = tpu.matmul %67, %73, %cst_75 {dimension_numbers = #tpu.dot_dimension_numbers<[1], [0], [0], [1], [0, 0, 1, 1], [], []>} : vector<2x8xf32>, vector<8x8xf32>, vector<2x8xf32> -> vector<2x8xf32>
    %cst_76 = arith.constant dense<0.000000e+00> : vector<2x8xf32>
    %77 = tpu.matmul %69, %71, %cst_76 {dimension_numbers = #tpu.dot_dimension_numbers<[1], [0], [0], [1], [0, 0, 1, 1], [], []>} : vector<2x8xf32>, vector<8x8xf32>, vector<2x8xf32> -> vector<2x8xf32>
    %78 = arith.subf %74, %75 : vector<2x8xf32>
    %79 = arith.addf %76, %77 : vector<2x8xf32>
    %80 = tpu.concatenate %78, %79 in 1 : vector<2x8xf32>, vector<2x8xf32> -> vector<2x16xf32>
    %c3_77 = arith.constant 3 : index
    %c0_78 = arith.constant 0 : index
    %c0_79 = arith.constant 0 : index
    %81 = vector.load %arg6[%c3_77, %c0_78, %c0_79] : memref<8x1x16xf32, #tpu.memory_space<vmem>>, vector<1x1x16xf32>
    %82 = vector.shape_cast %81 : vector<1x1x16xf32> to vector<1x16xf32>
    %83 = vector.broadcast %82 : vector<1x16xf32> to vector<2x16xf32>
    %84 = arith.addf %80, %83 : vector<2x16xf32>
    %c0_80 = arith.constant 0 : index
    %c3_81 = arith.constant 3 : index
    %c0_82 = arith.constant 0 : index
    %85 = vector.load %arg7[%c0_80, %c3_81, %c0_82] : memref<2x8x16xf32, #tpu.memory_space<vmem>>, vector<2x1x16xf32>
    %86 = vector.shape_cast %85 : vector<2x1x16xf32> to vector<2x16xf32>
    %87 = vector.shape_cast %84 : vector<2x16xf32> to vector<2x1x16xf32>
    tpu.vector_store %arg7[%c0_80, %c3_81, %c0_82], %87 {strides = array<i32>} : memref<2x8x16xf32, #tpu.memory_space<vmem>>, vector<2x1x16xf32>,
    %c0_83 = arith.constant 0 : index
    %c4 = arith.constant 4 : index
    %c0_84 = arith.constant 0 : index
    %88 = vector.load %arg2[%c0_83, %c4, %c0_84] : memref<2x8x8xf32, #tpu.memory_space<vmem>>, vector<2x1x8xf32>
    %89 = vector.shape_cast %88 : vector<2x1x8xf32> to vector<2x8xf32>
    %c0_85 = arith.constant 0 : index
    %c4_86 = arith.constant 4 : index
    %c0_87 = arith.constant 0 : index
    %90 = vector.load %arg3[%c0_85, %c4_86, %c0_87] : memref<2x8x8xf32, #tpu.memory_space<vmem>>, vector<2x1x8xf32>
    %91 = vector.shape_cast %90 : vector<2x1x8xf32> to vector<2x8xf32>
    %c4_88 = arith.constant 4 : index
    %c0_89 = arith.constant 0 : index
    %c0_90 = arith.constant 0 : index
    %92 = vector.load %arg4[%c4_88, %c0_89, %c0_90] : memref<8x8x8xf32, #tpu.memory_space<vmem>>, vector<1x8x8xf32>
    %93 = vector.shape_cast %92 : vector<1x8x8xf32> to vector<8x8xf32>
    %c4_91 = arith.constant 4 : index
    %c0_92 = arith.constant 0 : index
    %c0_93 = arith.constant 0 : index
    %94 = vector.load %arg5[%c4_91, %c0_92, %c0_93] : memref<8x8x8xf32, #tpu.memory_space<vmem>>, vector<1x8x8xf32>
    %95 = vector.shape_cast %94 : vector<1x8x8xf32> to vector<8x8xf32>
    %cst_94 = arith.constant dense<0.000000e+00> : vector<2x8xf32>
    %96 = tpu.matmul %89, %93, %cst_94 {dimension_numbers = #tpu.dot_dimension_numbers<[1], [0], [0], [1], [0, 0, 1, 1], [], []>} : vector<2x8xf32>, vector<8x8xf32>, vector<2x8xf32> -> vector<2x8xf32>
    %cst_95 = arith.constant dense<0.000000e+00> : vector<2x8xf32>
    %97 = tpu.matmul %91, %95, %cst_95 {dimension_numbers = #tpu.dot_dimension_numbers<[1], [0], [0], [1], [0, 0, 1, 1], [], []>} : vector<2x8xf32>, vector<8x8xf32>, vector<2x8xf32> -> vector<2x8xf32>
    %cst_96 = arith.constant dense<0.000000e+00> : vector<2x8xf32>
    %98 = tpu.matmul %89, %95, %cst_96 {dimension_numbers = #tpu.dot_dimension_numbers<[1], [0], [0], [1], [0, 0, 1, 1], [], []>} : vector<2x8xf32>, vector<8x8xf32>, vector<2x8xf32> -> vector<2x8xf32>
    %cst_97 = arith.constant dense<0.000000e+00> : vector<2x8xf32>
    %99 = tpu.matmul %91, %93, %cst_97 {dimension_numbers = #tpu.dot_dimension_numbers<[1], [0], [0], [1], [0, 0, 1, 1], [], []>} : vector<2x8xf32>, vector<8x8xf32>, vector<2x8xf32> -> vector<2x8xf32>
    %100 = arith.subf %96, %97 : vector<2x8xf32>
    %101 = arith.addf %98, %99 : vector<2x8xf32>
    %102 = tpu.concatenate %100, %101 in 1 : vector<2x8xf32>, vector<2x8xf32> -> vector<2x16xf32>
    %c4_98 = arith.constant 4 : index
    %c0_99 = arith.constant 0 : index
    %c0_100 = arith.constant 0 : index
    %103 = vector.load %arg6[%c4_98, %c0_99, %c0_100] : memref<8x1x16xf32, #tpu.memory_space<vmem>>, vector<1x1x16xf32>
    %104 = vector.shape_cast %103 : vector<1x1x16xf32> to vector<1x16xf32>
    %105 = vector.broadcast %104 : vector<1x16xf32> to vector<2x16xf32>
    %106 = arith.addf %102, %105 : vector<2x16xf32>
    %c0_101 = arith.constant 0 : index
    %c4_102 = arith.constant 4 : index
    %c0_103 = arith.constant 0 : index
    %107 = vector.load %arg7[%c0_101, %c4_102, %c0_103] : memref<2x8x16xf32, #tpu.memory_space<vmem>>, vector<2x1x16xf32>
    %108 = vector.shape_cast %107 : vector<2x1x16xf32> to vector<2x16xf32>
    %109 = vector.shape_cast %106 : vector<2x16xf32> to vector<2x1x16xf32>
    tpu.vector_store %arg7[%c0_101, %c4_102, %c0_103], %109 {strides = array<i32>} : memref<2x8x16xf32, #tpu.memory_space<vmem>>, vector<2x1x16xf32>,
    %c0_104 = arith.constant 0 : index
    %c5 = arith.constant 5 : index
    %c0_105 = arith.constant 0 : index
    %110 = vector.load %arg2[%c0_104, %c5, %c0_105] : memref<2x8x8xf32, #tpu.memory_space<vmem>>, vector<2x1x8xf32>
    %111 = vector.shape_cast %110 : vector<2x1x8xf32> to vector<2x8xf32>
    %c0_106 = arith.constant 0 : index
    %c5_107 = arith.constant 5 : index
    %c0_108 = arith.constant 0 : index
    %112 = vector.load %arg3[%c0_106, %c5_107, %c0_108] : memref<2x8x8xf32, #tpu.memory_space<vmem>>, vector<2x1x8xf32>
    %113 = vector.shape_cast %112 : vector<2x1x8xf32> to vector<2x8xf32>
    %c5_109 = arith.constant 5 : index
    %c0_110 = arith.constant 0 : index
    %c0_111 = arith.constant 0 : index
    %114 = vector.load %arg4[%c5_109, %c0_110, %c0_111] : memref<8x8x8xf32, #tpu.memory_space<vmem>>, vector<1x8x8xf32>
    %115 = vector.shape_cast %114 : vector<1x8x8xf32> to vector<8x8xf32>
    %c5_112 = arith.constant 5 : index
    %c0_113 = arith.constant 0 : index
    %c0_114 = arith.constant 0 : index
    %116 = vector.load %arg5[%c5_112, %c0_113, %c0_114] : memref<8x8x8xf32, #tpu.memory_space<vmem>>, vector<1x8x8xf32>
    %117 = vector.shape_cast %116 : vector<1x8x8xf32> to vector<8x8xf32>
    %cst_115 = arith.constant dense<0.000000e+00> : vector<2x8xf32>
    %118 = tpu.matmul %111, %115, %cst_115 {dimension_numbers = #tpu.dot_dimension_numbers<[1], [0], [0], [1], [0, 0, 1, 1], [], []>} : vector<2x8xf32>, vector<8x8xf32>, vector<2x8xf32> -> vector<2x8xf32>
    %cst_116 = arith.constant dense<0.000000e+00> : vector<2x8xf32>
    %119 = tpu.matmul %113, %117, %cst_116 {dimension_numbers = #tpu.dot_dimension_numbers<[1], [0], [0], [1], [0, 0, 1, 1], [], []>} : vector<2x8xf32>, vector<8x8xf32>, vector<2x8xf32> -> vector<2x8xf32>
    %cst_117 = arith.constant dense<0.000000e+00> : vector<2x8xf32>
    %120 = tpu.matmul %111, %117, %cst_117 {dimension_numbers = #tpu.dot_dimension_numbers<[1], [0], [0], [1], [0, 0, 1, 1], [], []>} : vector<2x8xf32>, vector<8x8xf32>, vector<2x8xf32> -> vector<2x8xf32>
    %cst_118 = arith.constant dense<0.000000e+00> : vector<2x8xf32>
    %121 = tpu.matmul %113, %115, %cst_118 {dimension_numbers = #tpu.dot_dimension_numbers<[1], [0], [0], [1], [0, 0, 1, 1], [], []>} : vector<2x8xf32>, vector<8x8xf32>, vector<2x8xf32> -> vector<2x8xf32>
    %122 = arith.subf %118, %119 : vector<2x8xf32>
    %123 = arith.addf %120, %121 : vector<2x8xf32>
    %124 = tpu.concatenate %122, %123 in 1 : vector<2x8xf32>, vector<2x8xf32> -> vector<2x16xf32>
    %c5_119 = arith.constant 5 : index
    %c0_120 = arith.constant 0 : index
    %c0_121 = arith.constant 0 : index
    %125 = vector.load %arg6[%c5_119, %c0_120, %c0_121] : memref<8x1x16xf32, #tpu.memory_space<vmem>>, vector<1x1x16xf32>
    %126 = vector.shape_cast %125 : vector<1x1x16xf32> to vector<1x16xf32>
    %127 = vector.broadcast %126 : vector<1x16xf32> to vector<2x16xf32>
    %128 = arith.addf %124, %127 : vector<2x16xf32>
    %c0_122 = arith.constant 0 : index
    %c5_123 = arith.constant 5 : index
    %c0_124 = arith.constant 0 : index
    %129 = vector.load %arg7[%c0_122, %c5_123, %c0_124] : memref<2x8x16xf32, #tpu.memory_space<vmem>>, vector<2x1x16xf32>
    %130 = vector.shape_cast %129 : vector<2x1x16xf32> to vector<2x16xf32>
    %131 = vector.shape_cast %128 : vector<2x16xf32> to vector<2x1x16xf32>
    tpu.vector_store %arg7[%c0_122, %c5_123, %c0_124], %131 {strides = array<i32>} : memref<2x8x16xf32, #tpu.memory_space<vmem>>, vector<2x1x16xf32>,
    %c0_125 = arith.constant 0 : index
    %c6 = arith.constant 6 : index
    %c0_126 = arith.constant 0 : index
    %132 = vector.load %arg2[%c0_125, %c6, %c0_126] : memref<2x8x8xf32, #tpu.memory_space<vmem>>, vector<2x1x8xf32>
    %133 = vector.shape_cast %132 : vector<2x1x8xf32> to vector<2x8xf32>
    %c0_127 = arith.constant 0 : index
    %c6_128 = arith.constant 6 : index
    %c0_129 = arith.constant 0 : index
    %134 = vector.load %arg3[%c0_127, %c6_128, %c0_129] : memref<2x8x8xf32, #tpu.memory_space<vmem>>, vector<2x1x8xf32>
    %135 = vector.shape_cast %134 : vector<2x1x8xf32> to vector<2x8xf32>
    %c6_130 = arith.constant 6 : index
    %c0_131 = arith.constant 0 : index
    %c0_132 = arith.constant 0 : index
    %136 = vector.load %arg4[%c6_130, %c0_131, %c0_132] : memref<8x8x8xf32, #tpu.memory_space<vmem>>, vector<1x8x8xf32>
    %137 = vector.shape_cast %136 : vector<1x8x8xf32> to vector<8x8xf32>
    %c6_133 = arith.constant 6 : index
    %c0_134 = arith.constant 0 : index
    %c0_135 = arith.constant 0 : index
    %138 = vector.load %arg5[%c6_133, %c0_134, %c0_135] : memref<8x8x8xf32, #tpu.memory_space<vmem>>, vector<1x8x8xf32>
    %139 = vector.shape_cast %138 : vector<1x8x8xf32> to vector<8x8xf32>
    %cst_136 = arith.constant dense<0.000000e+00> : vector<2x8xf32>
    %140 = tpu.matmul %133, %137, %cst_136 {dimension_numbers = #tpu.dot_dimension_numbers<[1], [0], [0], [1], [0, 0, 1, 1], [], []>} : vector<2x8xf32>, vector<8x8xf32>, vector<2x8xf32> -> vector<2x8xf32>
    %cst_137 = arith.constant dense<0.000000e+00> : vector<2x8xf32>
    %141 = tpu.matmul %135, %139, %cst_137 {dimension_numbers = #tpu.dot_dimension_numbers<[1], [0], [0], [1], [0, 0, 1, 1], [], []>} : vector<2x8xf32>, vector<8x8xf32>, vector<2x8xf32> -> vector<2x8xf32>
    %cst_138 = arith.constant dense<0.000000e+00> : vector<2x8xf32>
    %142 = tpu.matmul %133, %139, %cst_138 {dimension_numbers = #tpu.dot_dimension_numbers<[1], [0], [0], [1], [0, 0, 1, 1], [], []>} : vector<2x8xf32>, vector<8x8xf32>, vector<2x8xf32> -> vector<2x8xf32>
    %cst_139 = arith.constant dense<0.000000e+00> : vector<2x8xf32>
    %143 = tpu.matmul %135, %137, %cst_139 {dimension_numbers = #tpu.dot_dimension_numbers<[1], [0], [0], [1], [0, 0, 1, 1], [], []>} : vector<2x8xf32>, vector<8x8xf32>, vector<2x8xf32> -> vector<2x8xf32>
    %144 = arith.subf %140, %141 : vector<2x8xf32>
    %145 = arith.addf %142, %143 : vector<2x8xf32>
    %146 = tpu.concatenate %144, %145 in 1 : vector<2x8xf32>, vector<2x8xf32> -> vector<2x16xf32>
    %c6_140 = arith.constant 6 : index
    %c0_141 = arith.constant 0 : index
    %c0_142 = arith.constant 0 : index
    %147 = vector.load %arg6[%c6_140, %c0_141, %c0_142] : memref<8x1x16xf32, #tpu.memory_space<vmem>>, vector<1x1x16xf32>
    %148 = vector.shape_cast %147 : vector<1x1x16xf32> to vector<1x16xf32>
    %149 = vector.broadcast %148 : vector<1x16xf32> to vector<2x16xf32>
    %150 = arith.addf %146, %149 : vector<2x16xf32>
    %c0_143 = arith.constant 0 : index
    %c6_144 = arith.constant 6 : index
    %c0_145 = arith.constant 0 : index
    %151 = vector.load %arg7[%c0_143, %c6_144, %c0_145] : memref<2x8x16xf32, #tpu.memory_space<vmem>>, vector<2x1x16xf32>
    %152 = vector.shape_cast %151 : vector<2x1x16xf32> to vector<2x16xf32>
    %153 = vector.shape_cast %150 : vector<2x16xf32> to vector<2x1x16xf32>
    tpu.vector_store %arg7[%c0_143, %c6_144, %c0_145], %153 {strides = array<i32>} : memref<2x8x16xf32, #tpu.memory_space<vmem>>, vector<2x1x16xf32>,
    %c0_146 = arith.constant 0 : index
    %c7 = arith.constant 7 : index
    %c0_147 = arith.constant 0 : index
    %154 = vector.load %arg2[%c0_146, %c7, %c0_147] : memref<2x8x8xf32, #tpu.memory_space<vmem>>, vector<2x1x8xf32>
    %155 = vector.shape_cast %154 : vector<2x1x8xf32> to vector<2x8xf32>
    %c0_148 = arith.constant 0 : index
    %c7_149 = arith.constant 7 : index
    %c0_150 = arith.constant 0 : index
    %156 = vector.load %arg3[%c0_148, %c7_149, %c0_150] : memref<2x8x8xf32, #tpu.memory_space<vmem>>, vector<2x1x8xf32>
    %157 = vector.shape_cast %156 : vector<2x1x8xf32> to vector<2x8xf32>
    %c7_151 = arith.constant 7 : index
    %c0_152 = arith.constant 0 : index
    %c0_153 = arith.constant 0 : index
    %158 = vector.load %arg4[%c7_151, %c0_152, %c0_153] : memref<8x8x8xf32, #tpu.memory_space<vmem>>, vector<1x8x8xf32>
    %159 = vector.shape_cast %158 : vector<1x8x8xf32> to vector<8x8xf32>
    %c7_154 = arith.constant 7 : index
    %c0_155 = arith.constant 0 : index
    %c0_156 = arith.constant 0 : index
    %160 = vector.load %arg5[%c7_154, %c0_155, %c0_156] : memref<8x8x8xf32, #tpu.memory_space<vmem>>, vector<1x8x8xf32>
    %161 = vector.shape_cast %160 : vector<1x8x8xf32> to vector<8x8xf32>
    %cst_157 = arith.constant dense<0.000000e+00> : vector<2x8xf32>
    %162 = tpu.matmul %155, %159, %cst_157 {dimension_numbers = #tpu.dot_dimension_numbers<[1], [0], [0], [1], [0, 0, 1, 1], [], []>} : vector<2x8xf32>, vector<8x8xf32>, vector<2x8xf32> -> vector<2x8xf32>
    %cst_158 = arith.constant dense<0.000000e+00> : vector<2x8xf32>
    %163 = tpu.matmul %157, %161, %cst_158 {dimension_numbers = #tpu.dot_dimension_numbers<[1], [0], [0], [1], [0, 0, 1, 1], [], []>} : vector<2x8xf32>, vector<8x8xf32>, vector<2x8xf32> -> vector<2x8xf32>
    %cst_159 = arith.constant dense<0.000000e+00> : vector<2x8xf32>
    %164 = tpu.matmul %155, %161, %cst_159 {dimension_numbers = #tpu.dot_dimension_numbers<[1], [0], [0], [1], [0, 0, 1, 1], [], []>} : vector<2x8xf32>, vector<8x8xf32>, vector<2x8xf32> -> vector<2x8xf32>
    %cst_160 = arith.constant dense<0.000000e+00> : vector<2x8xf32>
    %165 = tpu.matmul %157, %159, %cst_160 {dimension_numbers = #tpu.dot_dimension_numbers<[1], [0], [0], [1], [0, 0, 1, 1], [], []>} : vector<2x8xf32>, vector<8x8xf32>, vector<2x8xf32> -> vector<2x8xf32>
    %166 = arith.subf %162, %163 : vector<2x8xf32>
    %167 = arith.addf %164, %165 : vector<2x8xf32>
    %168 = tpu.concatenate %166, %167 in 1 : vector<2x8xf32>, vector<2x8xf32> -> vector<2x16xf32>
    %c7_161 = arith.constant 7 : index
    %c0_162 = arith.constant 0 : index
    %c0_163 = arith.constant 0 : index
    %169 = vector.load %arg6[%c7_161, %c0_162, %c0_163] : memref<8x1x16xf32, #tpu.memory_space<vmem>>, vector<1x1x16xf32>
    %170 = vector.shape_cast %169 : vector<1x1x16xf32> to vector<1x16xf32>
    %171 = vector.broadcast %170 : vector<1x16xf32> to vector<2x16xf32>
    %172 = arith.addf %168, %171 : vector<2x16xf32>
    %c0_164 = arith.constant 0 : index
    %c7_165 = arith.constant 7 : index
    %c0_166 = arith.constant 0 : index
    %173 = vector.load %arg7[%c0_164, %c7_165, %c0_166] : memref<2x8x16xf32, #tpu.memory_space<vmem>>, vector<2x1x16xf32>
    %174 = vector.shape_cast %173 : vector<2x1x16xf32> to vector<2x16xf32>
    %175 = vector.shape_cast %172 : vector<2x16xf32> to vector<2x1x16xf32>
    tpu.vector_store %arg7[%c0_164, %c7_165, %c0_166], %175 {strides = array<i32>} : memref<2x8x16xf32, #tpu.memory_space<vmem>>, vector<2x1x16xf32>,
    return
  }
  func.func @transform_0(%arg0: i32, %arg1: i32) -> (i32, i32, i32) {
    %c0_i32 = arith.constant 0 : i32
    %c0_i32_0 = arith.constant 0 : i32
    return %arg1, %arg0, %c0_i32 : i32, i32, i32
  }
  func.func @transform_1(%arg0: i32, %arg1: i32) -> (i32, i32, i32) {
    %c0_i32 = arith.constant 0 : i32
    %c0_i32_0 = arith.constant 0 : i32
    return %arg1, %arg0, %c0_i32 : i32, i32, i32
  }
  func.func @transform_2(%arg0: i32, %arg1: i32) -> (i32, i32, i32) {
    %c0_i32 = arith.constant 0 : i32
    %c0_i32_0 = arith.constant 0 : i32
    %c0_i32_1 = arith.constant 0 : i32
    return %arg0, %c0_i32, %c0_i32_0 : i32, i32, i32
  }
  func.func @transform_3(%arg0: i32, %arg1: i32) -> (i32, i32, i32) {
    %c0_i32 = arith.constant 0 : i32
    %c0_i32_0 = arith.constant 0 : i32
    %c0_i32_1 = arith.constant 0 : i32
    return %arg0, %c0_i32, %c0_i32_0 : i32, i32, i32
  }
  func.func @transform_4(%arg0: i32, %arg1: i32) -> (i32, i32, i32) {
    %c0_i32 = arith.constant 0 : i32
    %c0_i32_0 = arith.constant 0 : i32
    %c0_i32_1 = arith.constant 0 : i32
    return %arg0, %c0_i32, %c0_i32_0 : i32, i32, i32
  }
  func.func @transform_5(%arg0: i32, %arg1: i32) -> (i32, i32, i32) {
    %c0_i32 = arith.constant 0 : i32
    %c0_i32_0 = arith.constant 0 : i32
    return %arg1, %arg0, %c0_i32 : i32, i32, i32
  }
}

</mosaic_0001>

<bundles_post_ra>
// kernel: tpu_custom_call.1
= control target key start
LH: loop header
LB: loop body
LE: loop exit
PB: predicated region body
PF: predicated region fallthrough
CT: control target
= control target key end

     0   :  { %10 = vsyncpa [#allocation3], 0  ;;  %s1411_s0 = inlined_call_operand.hbm [shape: f32[2,8,8], index: 0, kind: input, shape index: {}]   ;;  %s1412_s1 = inlined_call_operand.hbm [shape: f32[2,8,8], index: 1, kind: input, shape index: {}]   ;;  %s1413_s2 = inlined_call_operand.hbm [shape: f32[8,8,8], index: 2, kind: input, shape index: {}]   ;;  %s1414_s3 = inlined_call_operand.hbm [shape: f32[8,8,8], index: 3, kind: input, shape index: {}]   ;;  %s1415_s4 = inlined_call_operand.hbm [shape: f32[8,1,16], index: 4, kind: input, shape index: {}]   ;;  %s1416_s5 = inlined_call_operand.hbm [shape: f32[2,8,16], index: 5, kind: output, shape index: {}]  }
   0x1   :  { %11 = vsyncpa [#allocation6], 0 }
   0x2   :  { %12 = vsyncpa [#allocation9], 0 }
   0x3   :  { %13 = vsyncpa [#allocation4], 0  ;;  %s31_s20 = sshll.u32 %s1412_s1, 4  ;;  %s1258_s21 = smov [#allocation5]   ;;  %s32_s20 = int_to_ptr.hbm [resolvable:$true] %s31_s20 }
   0x4   :  { %s33_s22 = sshll.u32 %s1258_s21, 4  ;;  %s57_s25 = sshll.u32 %s1414_s3, 4  ;;  %s34_s22 = int_to_ptr.vmem [resolvable:$true] %s33_s22  ;;  %s58_s25 = int_to_ptr.hbm [resolvable:$true] %s57_s25 }
   0x5   :  { %s1259_s26 = smov 128   ;;  %s1260_s27 = smov 8  }
   0x6   :  { %39 = dma.hbm_to_vmem [thread:$0]  %s32_s20, 256, %s34_s22, [#allocation6], %s1259_s26, %s1259_s26, %s1260_s27  }
   0x7   :  { %s1261_s28 = smov [#allocation8]   ;;  %s18_s1 = sshll.u32 %s1411_s0, 4  ;;  %s19_s1 = int_to_ptr.hbm [resolvable:$true] %s18_s1 }
   0x8   :  { %s59_s29 = sshll.u32 %s1261_s28, 4  ;;  %s44_s8 = sshll.u32 %s1413_s2, 4  ;;  %s60_s29 = int_to_ptr.vmem [resolvable:$true] %s59_s29  ;;  %s45_s8 = int_to_ptr.hbm [resolvable:$true] %s44_s8 }
   0x9   :  { %65 = dma.hbm_to_vmem [thread:$0]  %s58_s25, 1024, %s60_s29, [#allocation9], %s1259_s26, %s1259_s26, %s1260_s27  }
   0xa   :  { %s1262_s9 = smov [#allocation2]   ;;  %s1263_s11 = smov [#allocation7]  }
   0xb   :  { %s20_s10 = sshll.u32 %s1262_s9, 4  ;;  %s46_s0 = sshll.u32 %s1263_s11, 4  ;;  %s21_s10 = int_to_ptr.vmem [resolvable:$true] %s20_s10  ;;  %s47_s0 = int_to_ptr.vmem [resolvable:$true] %s46_s0 }
   0xc   :  { %26 = dma.hbm_to_vmem [thread:$0]  %s19_s1, 256, %s21_s10, [#allocation3], %s1259_s26, %s1259_s26, %s1260_s27  }
   0xd   :  { %s70_s14 = sshll.u32 %s1415_s4, 4  ;;  %s1264_s2 = smov [#allocation10]   ;;  %s71_s14 = int_to_ptr.hbm [resolvable:$true] %s70_s14 }
   0xe   :  { %52 = dma.hbm_to_vmem [thread:$0]  %s45_s8, 1024, %s47_s0, [#allocation6], %s1259_s26, %s1259_s26, %s1260_s27  }
   0xf   :  { %s72_s15 = sshll.u32 %s1264_s2, 4  ;;  %s1265_s16 = smov 16   ;;  %s73_s15 = int_to_ptr.vmem [resolvable:$true] %s72_s15 }
  0x10   :  { %s1266_s17 = smov 1  }
  0x11   :  { %78 = dma.hbm_to_vmem [thread:$0]  %s71_s14, 128, %s73_s15, [#allocation9], %s1265_s16, %s1265_s16, %s1266_s17  }
  0x12   :  { %1250 = dma.done.wait [#allocation3], 256  }
  0x13   :  { %1251 = vsyncadd [#allocation3], 4294967040 }
  0x14   :  { %1252 = dma.done.wait [#allocation6], 1280  }
  0x15   :  { %1253 = vsyncadd [#allocation6], 4294966016 }
  0x16   :  { %1254 = dma.done.wait [#allocation9], 1152  }
  0x17   :  { %1255 = vsyncadd [#allocation9], 4294966144  ;;  %v103_v0 = vld [vmem:[#allocation7] sm:$0xff]  ;;  %v101_v2 = vld [vmem:[#allocation5] sm:$0x1]  ;;  %vm108_vm0 = vcmask 1041409  }
  0x18   :  { %v104_v1 = vld [vmem:[#allocation8] sm:$0xff]  ;;  %174 = vmatpush.msra.mxu2 %v103_v0  ;;  %v102_v3 = vld [vmem:[#allocation5 + $0x8] sm:$0x1]  ;;  %v100_v5 = vld [vmem:[#allocation2 + $0x8] sm:$0x1]  ;;  %vm110_vm1 = vcmask 64512   ;;  %128 = vmatpush.msra.mxu0 %v103_v0 }
  0x19   :  { %195 = vmatpush.msra.mxu3 %v104_v1  ;;  %v99_v4 = vld [vmem:[#allocation2] sm:$0x1]  ;;  %v135_v6 = vrot.slane %v102_v3, 7  ;;  %v107_v7 = vrot.slane %v100_v5, 7  ;;  %v221_v8 = vld [vmem:[#allocation7 + $0x8] sm:$0xff]  ;;  %154 = vmatpush.msra.mxu1 %v104_v1  ;;  %v338_v14 = vld [vmem:[#allocation7 + $0x10] sm:$0xff] }
  0x1a   :  { %v223_v9 = vld [vmem:[#allocation8 + $0x8] sm:$0xff]  ;;  %291 = vmatpush.msrb.mxu2 %v221_v8  ;;  %v219_v10 = vld [vmem:[#allocation5 + $0x9] sm:$0x1]  ;;  %v340_v15 = vld [vmem:[#allocation8 + $0x10] sm:$0xff]  ;;  %245 = vmatpush.msrb.mxu0 %v221_v8  ;;  %vm213_vm2 = vcmask 122880   ;;  %s1267_s4 = smov [#allocation11]  }
  0x1b   :  { %312 = vmatpush.msrb.mxu3 %v223_v9  ;;  %v217_v11 = vld [vmem:[#allocation2 + $0x9] sm:$0x1]  ;;  %v136_v12 = vsel %vm108_vm0, %v135_v6, %v101_v2  ;;  %v109_v13 = vsel %vm108_vm0, %v107_v7, %v99_v4  ;;  %271 = vmatpush.msrb.mxu1 %v223_v9  ;;  %v252_v16 = vrot.slane %v219_v10, 7  ;;  %v218_v18 = vld [vmem:[#allocation5 + $0x1] sm:$0x1]  ;;  %v455_v24 = vld [vmem:[#allocation7 + $0x18] sm:$0xff] }
  0x1c   :  { %1058 = vmatmul.msk.f32.vlgmr.msra.gmra.mxu2 %vm110_vm1, %v136_v12  ;;  %1059 = vmatmul.msk.f32.vlgmr.msra.gmra.mxu3 %vm110_vm1, %v109_v13  ;;  %v226_v17 = vrot.slane %v217_v11, 7  ;;  %v216_v19 = vld [vmem:[#allocation2 + $0x1] sm:$0x1]  ;;  %v336_v22 = vld [vmem:[#allocation5 + $0xa] sm:$0x1]  ;;  %v689_v44 = vld [vmem:[#allocation7 + $0x28] sm:$0xff] }
  0x1d   :  { %408 = vmatpush.msra.mxu2 %v338_v14  ;;  %429 = vmatpush.msra.mxu3 %v340_v15  ;;  %v253_v20 = vsel %vm108_vm0, %v252_v16, %v218_v18  ;;  %v334_v23 = vld [vmem:[#allocation2 + $0xa] sm:$0x1]  ;;  %v457_v25 = vld [vmem:[#allocation8 + $0x18] sm:$0xff]  ;;  %v335_v26 = vld [vmem:[#allocation5 + $0x2] sm:$0x1]  ;;  %v369_v27 = vrot.slane %v336_v22, 7 }
  0x1e   :  { %1056 = vmatmul.msk.f32.vlgmr.msra.gmra.mxu0 %vm110_vm1, %v109_v13  ;;  %1057 = vmatmul.msk.f32.vlgmr.msra.gmra.mxu1 %vm110_vm1, %v136_v12  ;;  %v227_v21 = vsel %vm108_vm0, %v226_v17, %v216_v19  ;;  %v343_v28 = vrot.slane %v334_v23, 7  ;;  %v333_v29 = vld [vmem:[#allocation2 + $0x2] sm:$0x1]  ;;  %v453_v32 = vld [vmem:[#allocation5 + $0xb] sm:$0x1]  ;;  %v691_v45 = vld [vmem:[#allocation8 + $0x28] sm:$0xff] }
  0x1f   :  { %362 = vmatpush.msra.mxu0 %v338_v14  ;;  %388 = vmatpush.msra.mxu1 %v340_v15  ;;  %v370_v30 = vsel %vm108_vm0, %v369_v27, %v335_v26  ;;  %v451_v33 = vld [vmem:[#allocation2 + $0xb] sm:$0x1]  ;;  %v572_v34 = vld [vmem:[#allocation7 + $0x20] sm:$0xff]  ;;  %v486_v36 = vrot.slane %v453_v32, 7  ;;  %v452_v38 = vld [vmem:[#allocation5 + $0x3] sm:$0x1] }
  0x20   :  { %v344_v31 = vsel %vm108_vm0, %v343_v28, %v333_v29  ;;  %v574_v35 = vld [vmem:[#allocation8 + $0x20] sm:$0xff]  ;;  %v460_v37 = vrot.slane %v451_v33, 7  ;;  %v570_v42 = vld [vmem:[#allocation5 + $0xc] sm:$0x1]  ;;  %v568_v43 = vld [vmem:[#allocation2 + $0xc] sm:$0x1] }
  0x21   :  { %v450_v39 = vld [vmem:[#allocation2 + $0x3] sm:$0x1]  ;;  %v487_v40 = vsel %vm108_vm0, %v486_v36, %v452_v38  ;;  %v603_v46 = vrot.slane %v570_v42, 7  ;;  %v577_v47 = vrot.slane %v568_v43, 7  ;;  %v569_v48 = vld [vmem:[#allocation5 + $0x4] sm:$0x1] }
  0x22   :  { %v461_v41 = vsel %vm108_vm0, %v460_v37, %v450_v39  ;;  %v567_v49 = vld [vmem:[#allocation2 + $0x4] sm:$0x1]  ;;  %v687_v52 = vld [vmem:[#allocation5 + $0xd] sm:$0x1]  ;;  %v685_v53 = vld [vmem:[#allocation2 + $0xd] sm:$0x1] }
  0x23   :  { %v604_v50 = vsel %vm108_vm0, %v603_v46, %v569_v48  ;;  %v578_v51 = vsel %vm108_vm0, %v577_v47, %v567_v49  ;;  %v806_v54 = vld [vmem:[#allocation7 + $0x30] sm:$0xff]  ;;  %v720_v56 = vrot.slane %v687_v52, 7  ;;  %v694_v57 = vrot.slane %v685_v53, 7  ;;  %v684_v59 = vld [vmem:[#allocation2 + $0x5] sm:$0x1]  ;;  %v923_v0 = vld [vmem:[#allocation7 + $0x38] sm:$0xff] }
  0x24   :  { %1062 = vmatmul.msk.f32.vlgmr.msrb.gmra.mxu2 %vm110_vm1, %v253_v20  ;;  %1063 = vmatmul.msk.f32.vlgmr.msrb.gmra.mxu3 %vm110_vm1, %v227_v21  ;;  %v808_v55 = vld [vmem:[#allocation8 + $0x30] sm:$0xff]  ;;  %v804_v62 = vld [vmem:[#allocation5 + $0xe] sm:$0x1]  ;;  %v802_v63 = vld [vmem:[#allocation2 + $0xe] sm:$0x1]  ;;  %s1039_s18 = sshll.u32 %s1267_s4, 4  ;;  %s1040_s18 = int_to_ptr.vmem [resolvable:$true] %s1039_s18 }
  0x25   :  { %525 = vmatpush.msrb.mxu2 %v455_v24  ;;  %546 = vmatpush.msrb.mxu3 %v457_v25  ;;  %v686_v58 = vld [vmem:[#allocation5 + $0x5] sm:$0x1]  ;;  %v695_v61 = vsel %vm108_vm0, %v694_v57, %v684_v59  ;;  %v925_v1 = vld [vmem:[#allocation8 + $0x38] sm:$0xff]  ;;  %v837_v2 = vrot.slane %v804_v62, 7  ;;  %v811_v3 = vrot.slane %v802_v63, 7  ;;  %s1041_s21 = sshll.u32 %s1416_s5, 4  ;;  %s1042_s21 = int_to_ptr.hbm [resolvable:$true] %s1041_s21 }
  0x26   :  { %1060 = vmatmul.msk.f32.vlgmr.msrb.gmra.mxu0 %vm110_vm1, %v227_v21  ;;  %1061 = vmatmul.msk.f32.vlgmr.msrb.gmra.mxu1 %vm110_vm1, %v253_v20  ;;  %v721_v60 = vsel %vm108_vm0, %v720_v56, %v686_v58  ;;  %v803_v4 = vld [vmem:[#allocation5 + $0x6] sm:$0x1]  ;;  %v801_v5 = vld [vmem:[#allocation2 + $0x6] sm:$0x1]  ;;  %v921_v8 = vld [vmem:[#allocation5 + $0xf] sm:$0x1] }
  0x27   :  { %479 = vmatpush.msrb.mxu0 %v455_v24  ;;  %505 = vmatpush.msrb.mxu1 %v457_v25  ;;  %v838_v6 = vsel %vm108_vm0, %v837_v2, %v803_v4  ;;  %v812_v7 = vsel %vm108_vm0, %v811_v3, %v801_v5  ;;  %v919_v9 = vld [vmem:[#allocation2 + $0xf] sm:$0x1]  ;;  %v954_v10 = vrot.slane %v921_v8, 7  ;;  %v920_v12 = vld [vmem:[#allocation5 + $0x7] sm:$0x1] }
  0x28   :  { %v928_v11 = vrot.slane %v919_v9, 7  ;;  %v918_v13 = vld [vmem:[#allocation2 + $0x7] sm:$0x1]  ;;  %v1098_v49 = vld [vmem:[#allocation10] ss:$0 sm:$0xff] }
  0x29   :  { %v955_v14 = vsel %vm108_vm0, %v954_v10, %v920_v12  ;;  %v1099_v58 = vld [vmem:[#allocation10 + $0x4] ss:$0 sm:$0xff]  ;;  %v1100_v59 = vld [vmem:[#allocation10 + $0x1] ss:$0 sm:$0xff]  ;;  %v1101_v8 = vld [vmem:[#allocation10 + $0x5] ss:$0 sm:$0xff] }
  0x2a   :  { %v929_v15 = vsel %vm108_vm0, %v928_v11, %v918_v13  ;;  %v1102_v9 = vld [vmem:[#allocation10 + $0x2] ss:$0 sm:$0xff] }
  0x2c   :  { %1066 = vmatmul.msk.f32.vlgmr.msra.gmra.mxu2 %vm110_vm1, %v370_v30  ;;  %1067 = vmatmul.msk.f32.vlgmr.msra.gmra.mxu3 %vm110_vm1, %v344_v31 }
  0x2d   :  { %642 = vmatpush.msra.mxu2 %v572_v34  ;;  %663 = vmatpush.msra.mxu3 %v574_v35 }
  0x2e   :  { %1064 = vmatmul.msk.f32.vlgmr.msra.gmra.mxu0 %vm110_vm1, %v344_v31  ;;  %1065 = vmatmul.msk.f32.vlgmr.msra.gmra.mxu1 %vm110_vm1, %v370_v30 }
  0x2f   :  { %596 = vmatpush.msra.mxu0 %v572_v34  ;;  %622 = vmatpush.msra.mxu1 %v574_v35 }
  0x34   :  { %1070 = vmatmul.msk.f32.vlgmr.msrb.gmra.mxu2 %vm110_vm1, %v487_v40  ;;  %1071 = vmatmul.msk.f32.vlgmr.msrb.gmra.mxu3 %vm110_vm1, %v461_v41 }
  0x35   :  { %759 = vmatpush.msrb.mxu2 %v689_v44  ;;  %780 = vmatpush.msrb.mxu3 %v691_v45 }
  0x36   :  { %1068 = vmatmul.msk.f32.vlgmr.msrb.gmra.mxu0 %vm110_vm1, %v461_v41  ;;  %1069 = vmatmul.msk.f32.vlgmr.msrb.gmra.mxu1 %vm110_vm1, %v487_v40 }
  0x37   :  { %713 = vmatpush.msrb.mxu0 %v689_v44  ;;  %739 = vmatpush.msrb.mxu1 %v691_v45 }
  0x3c   :  { %1074 = vmatmul.msk.f32.vlgmr.msra.gmra.mxu2 %vm110_vm1, %v604_v50  ;;  %1075 = vmatmul.msk.f32.vlgmr.msra.gmra.mxu3 %vm110_vm1, %v578_v51 }
  0x3d   :  { %876 = vmatpush.msra.mxu2 %v806_v54  ;;  %897 = vmatpush.msra.mxu3 %v808_v55 }
  0x3e   :  { %1072 = vmatmul.msk.f32.vlgmr.msra.gmra.mxu0 %vm110_vm1, %v578_v51  ;;  %1073 = vmatmul.msk.f32.vlgmr.msra.gmra.mxu1 %vm110_vm1, %v604_v50 }
  0x3f   :  { %830 = vmatpush.msra.mxu0 %v806_v54  ;;  %856 = vmatpush.msra.mxu1 %v808_v55 }
  0x44   :  { %1078 = vmatmul.msk.f32.vlgmr.msrb.gmra.mxu2 %vm110_vm1, %v721_v60  ;;  %1079 = vmatmul.msk.f32.vlgmr.msrb.gmra.mxu3 %vm110_vm1, %v695_v61 }
  0x45   :  { %993 = vmatpush.msrb.mxu2 %v923_v0  ;;  %1014 = vmatpush.msrb.mxu3 %v925_v1 }
  0x46   :  { %1076 = vmatmul.msk.f32.vlgmr.msrb.gmra.mxu0 %vm110_vm1, %v695_v61  ;;  %1077 = vmatmul.msk.f32.vlgmr.msrb.gmra.mxu1 %vm110_vm1, %v721_v60 }
  0x47   :  { %947 = vmatpush.msrb.mxu0 %v923_v0  ;;  %973 = vmatpush.msrb.mxu1 %v925_v1 }
  0x4c   :  { %1082 = vmatmul.msk.f32.vlgmr.msra.gmra.mxu2 %vm110_vm1, %v838_v6  ;;  %1083 = vmatmul.msk.f32.vlgmr.msra.gmra.mxu3 %vm110_vm1, %v812_v7 }
  0x4e   :  { %1080 = vmatmul.msk.f32.vlgmr.msra.gmra.mxu0 %vm110_vm1, %v812_v7  ;;  %1081 = vmatmul.msk.f32.vlgmr.msra.gmra.mxu1 %vm110_vm1, %v838_v6 }
  0x54   :  { %1086 = vmatmul.msk.f32.vlgmr.msrb.gmra.mxu2 %vm110_vm1, %v955_v14  ;;  %1087 = vmatmul.msk.f32.vlgmr.msrb.gmra.mxu3 %vm110_vm1, %v929_v15 }
  0x56   :  { %1084 = vmatmul.msk.f32.vlgmr.msrb.gmra.mxu0 %vm110_vm1, %v929_v15  ;;  %1085 = vmatmul.msk.f32.vlgmr.msrb.gmra.mxu1 %vm110_vm1, %v955_v14 }
  0x9b   :  { %v130_v40 = vpop.f32.mrf.mxu0  ;;  %v156_v41 = vpop.f32.mrf.mxu1 }
  0x9c   :  { %v179_v48 = vsub.f32 %v130_v40, %v156_v41 }
  0x9f   :  { %v176_v16 = vpop.f32.mrf.mxu2  ;;  %v197_v17 = vpop.f32.mrf.mxu3 }
  0xa0   :  { %v198_v18 = vadd.f32 %v197_v17, %v176_v16 }
  0xa2   :  { %201 = vrot.lane.b32.xlu0 %v198_v18, %s1260_s27 }
  0xa3   :  { %v247_v42 = vpop.f32.mrf.mxu0  ;;  %v273_v43 = vpop.f32.mrf.mxu1 }
  0xa4   :  { %v296_v56 = vsub.f32 %v247_v42, %v273_v43 }
  0xa7   :  { %v293_v19 = vpop.f32.mrf.mxu2  ;;  %v314_v20 = vpop.f32.mrf.mxu3 }
  0xa8   :  { %v315_v21 = vadd.f32 %v314_v20, %v293_v19  ;;  %v1103_v19 = vld [vmem:[#allocation10 + $0x3] ss:$0 sm:$0xff] }
  0xaa   :  { %318 = vrot.lane.b32.xlu0 %v315_v21, %s1260_s27 }
  0xab   :  { %v364_v44 = vpop.f32.mrf.mxu0  ;;  %v390_v45 = vpop.f32.mrf.mxu1 }
  0xac   :  { %v413_v6 = vsub.f32 %v364_v44, %v390_v45 }
  0xaf   :  { %v410_v22 = vpop.f32.mrf.mxu2  ;;  %v431_v23 = vpop.f32.mrf.mxu3 }
  0xb0   :  { %v432_v24 = vadd.f32 %v431_v23, %v410_v22 }
  0xb2   :  { %435 = vrot.lane.b32.xlu1 %v432_v24, %s1260_s27 }
  0xb3   :  { %v481_v46 = vpop.f32.mrf.mxu0  ;;  %v507_v47 = vpop.f32.mrf.mxu1 }
  0xb4   :  { %v530_v18 = vsub.f32 %v481_v46, %v507_v47 }
  0xb7   :  { %v527_v25 = vpop.f32.mrf.mxu2  ;;  %v548_v26 = vpop.f32.mrf.mxu3 }
  0xb8   :  { %v549_v27 = vadd.f32 %v548_v26, %v527_v25 }
  0xba   :  { %552 = vrot.lane.b32.xlu1 %v549_v27, %s1260_s27  ;;  %v1104_v27 = vld [vmem:[#allocation10 + $0x6] ss:$0 sm:$0xff] }
  0xbb   :  { %v598_v50 = vpop.f32.mrf.mxu0  ;;  %v624_v52 = vpop.f32.mrf.mxu1 }
  0xbc   :  { %v647_v57 = vsub.f32 %v598_v50, %v624_v52 }
  0xbf   :  { %v644_v28 = vpop.f32.mrf.mxu2  ;;  %v665_v29 = vpop.f32.mrf.mxu3 }
  0xc0   :  { %v666_v30 = vadd.f32 %v665_v29, %v644_v28 }
  0xc2   :  { %669 = vrot.lane.b32.xlu2 %v666_v30, %s1260_s27 }
  0xc3   :  { %v715_v2 = vpop.f32.mrf.mxu0  ;;  %v741_v3 = vpop.f32.mrf.mxu1 }
  0xc4   :  { %v764_v7 = vsub.f32 %v715_v2, %v741_v3 }
  0xc7   :  { %v761_v31 = vpop.f32.mrf.mxu2  ;;  %v782_v32 = vpop.f32.mrf.mxu3 }
  0xc8   :  { %v783_v33 = vadd.f32 %v782_v32, %v761_v31 }
  0xca   :  { %786 = vrot.lane.b32.xlu2 %v783_v33, %s1260_s27 }
  0xcb   :  { %v832_v24 = vpop.f32.mrf.mxu0  ;;  %v858_v25 = vpop.f32.mrf.mxu1 }
  0xcc   :  { %v881_v26 = vsub.f32 %v832_v24, %v858_v25 }
  0xcf   :  { %v878_v34 = vpop.f32.mrf.mxu2  ;;  %v899_v35 = vpop.f32.mrf.mxu3 }
  0xd0   :  { %v900_v36 = vadd.f32 %v899_v35, %v878_v34  ;;  %v1105_v35 = vld [vmem:[#allocation10 + $0x7] ss:$0 sm:$0xff] }
  0xd2   :  { %903 = vrot.lane.b32.xlu0 %v900_v36, %s1260_s27 }
  0xd3   :  { %v949_v31 = vpop.f32.mrf.mxu0  ;;  %v975_v32 = vpop.f32.mrf.mxu1 }
  0xd4   :  { %v998_v34 = vsub.f32 %v949_v31, %v975_v32 }
  0xd7   :  { %v995_v37 = vpop.f32.mrf.mxu2  ;;  %v1016_v38 = vpop.f32.mrf.mxu3 }
  0xd8   :  { %v1017_v39 = vadd.f32 %v1016_v38, %v995_v37 }
  0xda   :  { %1020 = vrot.lane.b32.xlu1 %v1017_v39, %s1260_s27 }
 0x114   :  { %v202_v51 = vpop.permute.xlu0 %201 }
 0x115   :  { %v204_v53 = vsel %vm110_vm1, %v179_v48, %v202_v51 }
 0x116   :  { %v209_v54 = vadd.f32 %v1098_v49, %v204_v53 }
 0x118   :  { %v211_v55 = vrot.slane %v209_v54, 1  ;;  %214 = vst.msk [vmem:[#allocation11] sm:$0x1] %vm213_vm2, %v209_v54 }
 0x11a   :  { %215 = vst.msk [vmem:[#allocation11 + $0x8] sm:$0x1] %vm213_vm2, %v211_v55 }
 0x11c   :  { %v670_v60 = vpop.permute.xlu2 %669  ;;  %v319_v61 = vpop.permute.xlu0 %318 }
 0x11d   :  { %v672_v62 = vsel %vm110_vm1, %v647_v57, %v670_v60  ;;  %v321_v63 = vsel %vm110_vm1, %v296_v56, %v319_v61 }
 0x11e   :  { %v678_v0 = vadd.f32 %v1099_v58, %v672_v62  ;;  %v327_v1 = vadd.f32 %v1100_v59, %v321_v63 }
 0x120   :  { %v680_v4 = vrot.slane %v678_v0, 1  ;;  %682 = vst.msk [vmem:[#allocation11 + $0x4] sm:$0x1] %vm213_vm2, %v678_v0  ;;  %v329_v5 = vrot.slane %v327_v1, 1 }
 0x121   :  { %331 = vst.msk [vmem:[#allocation11 + $0x1] sm:$0x1] %vm213_vm2, %v327_v1 }
 0x122   :  { %683 = vst.msk [vmem:[#allocation11 + $0xc] sm:$0x1] %vm213_vm2, %v680_v4 }
 0x123   :  { %332 = vst.msk [vmem:[#allocation11 + $0x9] sm:$0x1] %vm213_vm2, %v329_v5 }
 0x124   :  { %v787_v10 = vpop.permute.xlu2 %786  ;;  %v436_v11 = vpop.permute.xlu1 %435 }
 0x125   :  { %v789_v12 = vsel %vm110_vm1, %v764_v7, %v787_v10  ;;  %v438_v13 = vsel %vm110_vm1, %v413_v6, %v436_v11 }
 0x126   :  { %v795_v14 = vadd.f32 %v1101_v8, %v789_v12  ;;  %v444_v15 = vadd.f32 %v1102_v9, %v438_v13 }
 0x128   :  { %v797_v16 = vrot.slane %v795_v14, 1  ;;  %799 = vst.msk [vmem:[#allocation11 + $0x5] sm:$0x1] %vm213_vm2, %v795_v14  ;;  %v446_v17 = vrot.slane %v444_v15, 1 }
 0x129   :  { %448 = vst.msk [vmem:[#allocation11 + $0x2] sm:$0x1] %vm213_vm2, %v444_v15 }
 0x12a   :  { %800 = vst.msk [vmem:[#allocation11 + $0xd] sm:$0x1] %vm213_vm2, %v797_v16 }
 0x12b   :  { %449 = vst.msk [vmem:[#allocation11 + $0xa] sm:$0x1] %vm213_vm2, %v446_v17 }
 0x12c   :  { %v553_v20 = vpop.permute.xlu1 %552 }
 0x12d   :  { %v555_v21 = vsel %vm110_vm1, %v530_v18, %v553_v20 }
 0x12e   :  { %v561_v22 = vadd.f32 %v1103_v19, %v555_v21 }
 0x130   :  { %v563_v23 = vrot.slane %v561_v22, 1  ;;  %565 = vst.msk [vmem:[#allocation11 + $0x3] sm:$0x1] %vm213_vm2, %v561_v22 }
 0x132   :  { %566 = vst.msk [vmem:[#allocation11 + $0xb] sm:$0x1] %vm213_vm2, %v563_v23 }
 0x144   :  { %v904_v28 = vpop.permute.xlu0 %903 }
 0x145   :  { %v906_v29 = vsel %vm110_vm1, %v881_v26, %v904_v28 }
 0x146   :  { %v912_v30 = vadd.f32 %v1104_v27, %v906_v29 }
 0x148   :  { %v914_v33 = vrot.slane %v912_v30, 1  ;;  %916 = vst.msk [vmem:[#allocation11 + $0x6] sm:$0x1] %vm213_vm2, %v912_v30 }
 0x14a   :  { %917 = vst.msk [vmem:[#allocation11 + $0xe] sm:$0x1] %vm213_vm2, %v914_v33 }
 0x14c   :  { %v1021_v36 = vpop.permute.xlu1 %1020 }
 0x14d   :  { %v1023_v37 = vsel %vm110_vm1, %v998_v34, %v1021_v36 }
 0x14e   :  { %v1029_v38 = vadd.f32 %v1105_v35, %v1023_v37 }
 0x150   :  { %v1031_v39 = vrot.slane %v1029_v38, 1  ;;  %1033 = vst.msk [vmem:[#allocation11 + $0x7] sm:$0x1] %vm213_vm2, %v1029_v38 }
 0x152   :  { %1034 = vst.msk [vmem:[#allocation11 + $0xf] sm:$0x1] %vm213_vm2, %v1031_v39 }
 0x153   :  { %1047 = dma.vmem_to_hbm [thread:$0]  %s1040_s18, 256, %s1042_s21, [#allocation4], %s1259_s26, %s1259_s26, %s1260_s27  }
 0x154   :  { %1256 = dma.done.wait [#allocation4], 256  }
 0x155   :  { %1257 = vsyncadd [#allocation4], 4294967040 }
 0x156   :  { %1052 = vsyncpa [#allocation3], 1 }
 0x157   :  { %1053 = vsyncpa [#allocation6], 1 }
 0x158   :  { %1054 = vsyncpa [#allocation9], 1 }
 0x159   :  { %1055 = vsyncpa [#allocation4], 1 }

</bundles_post_ra>
